<compile_context>
chip_gen: v7x
topology: tpu7x:2x2x1
jax: 0.10.0
libtpu: 0.0.40
codegen_flags: <defaults>
</compile_context>

<pallas_src>
import functools

import jax
import jax.numpy as jnp
from jax.experimental import pallas as pl
from jax.experimental.pallas import tpu as pltpu


def _round_up(x: int, m: int) -> int:
    return ((x + m - 1) // m) * m


# bf16 output packs 16 rows per sublane group; 16 is also a multiple of the
# f32 requirement (8), so one alignment works for every operand.
_SUBLANE_ALIGN = 16


# ----------------------------------------------------------------------------
# Kernel: 2 shared Linear+ReLU layers + fused (policy ++ value) head.
# One grid step processes a [bm, obs_dim] batch tile; all weights/biases are
# full-array VMEM blocks reused across grid steps.
# ----------------------------------------------------------------------------
def _ppo_forward_kernel(
    x_ref,            # [bm, obs_dim]            f32
    w1_ref, b1_ref,   # [obs_dim, H1] bf16, [1, H1] f32
    w2_ref, b2_ref,   # [H1, H2]      bf16, [1, H2] f32
    wh_ref, bh_ref,   # [H2, HW]      bf16, [1, HW] f32   (HW = 128-padded A+1)
    out_ref,          # [bm, HW]      out dtype (bf16 by default)
):
    # shared layer 1: Linear + ReLU (bf16 operands, f32 accumulate/elementwise;
    # ReLU kept in f32 so the same code is optimal on v5e's f32-only VALU)
    x = x_ref[...].astype(jnp.bfloat16)
    h1 = jnp.dot(x, w1_ref[...], preferred_element_type=jnp.float32) + b1_ref[...]
    h1 = jnp.maximum(h1, 0.0).astype(jnp.bfloat16)

    # shared layer 2: Linear + ReLU
    h2 = jnp.dot(h1, w2_ref[...], preferred_element_type=jnp.float32) + b2_ref[...]
    h2 = jnp.maximum(h2, 0.0).astype(jnp.bfloat16)

    # fused policy+value head: single lane-dense matmul + unmasked store
    out_ref[...] = (
        jnp.dot(h2, wh_ref[...], preferred_element_type=jnp.float32) + bh_ref[...]
    ).astype(out_ref.dtype)


@functools.partial(jax.jit, static_argnames=("action_dim", "block_m", "out_dtype"))
def ppo_forward(x, params, *, action_dim, block_m=1024, out_dtype=jnp.bfloat16):
    """Fused PPO forward. Returns (logits [B, A], value [B])."""
    w1, b1, w2, b2, wh, bh = params
    B, obs_dim = x.shape
    H1 = w1.shape[1]
    H2 = w2.shape[1]
    HW = wh.shape[1]            # lane-dense fused-head width (multiple of 128)

    # --- batch tiling --------------------------------------------------------
    # >= 2 balanced tiles whenever B allows it (feeds both v7x TensorCores via
    # the "parallel" grid axis); tile size chosen from the tile count so the
    # padding per tile never exceeds one sublane group.
    min_tiles = 2 if B >= 2 * _SUBLANE_ALIGN else 1
    n_tiles = max(pl.cdiv(B, block_m), min_tiles)
    bm = _round_up(pl.cdiv(B, n_tiles), _SUBLANE_ALIGN)
    B_pad = bm * n_tiles
    if B_pad != B:
        x = jnp.pad(x, ((0, B_pad - B), (0, 0)))
    grid = (n_tiles,)

    out_bytes = jnp.dtype(out_dtype).itemsize
    flops = 2 * B_pad * (obs_dim * H1 + H1 * H2 + H2 * HW)
    bytes_accessed = (
        B_pad * obs_dim * 4                                   # x (f32)
        + (obs_dim * H1 + H1 * H2 + H2 * HW) * 2              # weights (bf16)
        + (H1 + H2 + HW) * 4                                  # biases (f32)
        + B_pad * HW * out_bytes                              # fused-head output
    )

    out = pl.pallas_call(
        _ppo_forward_kernel,
        out_shape=jax.ShapeDtypeStruct((B_pad, HW), out_dtype),
        grid=grid,
        in_specs=[
            pl.BlockSpec((bm, obs_dim), lambda i: (i, 0)),
            # Weights/biases use a constant block index: they stay VMEM-resident
            # across grid steps (the pipeline skips re-DMA on a repeated index).
            pl.BlockSpec((obs_dim, H1), lambda i: (0, 0)),
            pl.BlockSpec((1, H1), lambda i: (0, 0)),
            pl.BlockSpec((H1, H2), lambda i: (0, 0)),
            pl.BlockSpec((1, H2), lambda i: (0, 0)),
            pl.BlockSpec((H2, HW), lambda i: (0, 0)),
            pl.BlockSpec((1, HW), lambda i: (0, 0)),
        ],
        out_specs=pl.BlockSpec((bm, HW), lambda i: (i, 0)),
        compiler_params=pltpu.CompilerParams(
            dimension_semantics=("parallel",),
            # bm up to ~2048 fits comfortably in 32 MiB; this lifts v5e's
            # 16 MiB scoped-VMEM default and matches the v6e/v7x defaults.
            vmem_limit_bytes=32 * 1024 * 1024,
        ),
        cost_estimate=pl.CostEstimate(
            flops=flops, transcendentals=0, bytes_accessed=bytes_accessed
        ),
    )(x, w1, b1, w2, b2, wh, bh)

    # TODO(synk): the slices below re-read the padded [B_pad, 128] slab; for
    # peak perf fuse the next consumer (log-softmax / ratio / value loss) into
    # this kernel instead of materializing logits/value separately.
    logits = out[:B, :action_dim]
    # torch: value.squeeze() -> (B,) for B > 1.
    # TODO(synk): for B == 1 torch returns a 0-d scalar; we keep shape (1,).
    # TODO(synk): bf16 output loses precision on the value column; pass
    # out_dtype=jnp.float32 if value-function targets are precision sensitive.
    value = out[:B, action_dim]
    return logits, value


# ----------------------------------------------------------------------------
# Parameter init (PyTorch nn.Linear default: U(-1/sqrt(fan_in), +1/sqrt(fan_in))).
# Weights stored (in_features, out_features), cast to bf16.  Policy and value
# head weights are concatenated and zero-padded to a multiple of 128 lanes.
# Biases stay f32, shape (1, out) so they broadcast over the batch sublanes.
# ----------------------------------------------------------------------------
def init_ppo_params(key, obs_dim, action_dim, hidden_dims=(512, 256)):
    dims = [obs_dim] + list(hidden_dims)
    keys = jax.random.split(key, 2 * (len(hidden_dims) + 2))
    ki = 0

    def linear(kw, kb, fan_in, fan_out):
        bound = 1.0 / jnp.sqrt(jnp.float32(fan_in))
        w = jax.random.uniform(kw, (fan_in, fan_out), jnp.float32, -bound, bound)
        b = jax.random.uniform(kb, (1, fan_out), jnp.float32, -bound, bound)
        return w, b

    shared = []
    for i in range(len(hidden_dims)):
        w, b = linear(keys[ki], keys[ki + 1], dims[i], dims[i + 1])
        ki += 2
        shared.extend([w.astype(jnp.bfloat16), b])

    # policy head
    wp, bp = linear(keys[ki], keys[ki + 1], dims[-1], action_dim)
    ki += 2
    # value head
    wv, bv = linear(keys[ki], keys[ki + 1], dims[-1], 1)

    # Fuse heads: [H2, A] ++ [H2, 1] -> [H2, A+1], zero-pad lanes to multiple of 128.
    head_w = jnp.concatenate([wp, wv], axis=1)
    head_b = jnp.concatenate([bp, bv], axis=1)
    HW = _round_up(action_dim + 1, 128)
    pad = HW - (action_dim + 1)
    head_w = jnp.pad(head_w, ((0, 0), (0, pad))).astype(jnp.bfloat16)
    head_b = jnp.pad(head_b, ((0, 0), (0, pad)))

    w1, b1, w2, b2 = shared
    return (w1, b1, w2, b2, head_w, head_b)


if __name__ == "__main__":
    key = jax.random.PRNGKey(0)
    k_params, k_x = jax.random.split(key)

    batch = 8
    obs_dim = 16
    action_dim = 4
    hidden_dims = (512, 256)  # module default

    params = init_ppo_params(k_params, obs_dim, action_dim, hidden_dims)
    x = jax.random.normal(k_x, (batch, obs_dim), jnp.float32)

    logits, value = ppo_forward(x, params, action_dim=action_dim)
    jax.block_until_ready((logits, value))

    assert logits.shape == (batch, action_dim), logits.shape
    assert value.shape == (batch,), value.shape

    # Reference in plain JAX using the same bf16 weights / f32 accumulation.
    w1, b1, w2, b2, wh, bh = params
    h = jnp.maximum(
        jnp.dot(x.astype(jnp.bfloat16), w1, preferred_element_type=jnp.float32) + b1, 0.0
    )
    h = jnp.maximum(
        jnp.dot(h.astype(jnp.bfloat16), w2, preferred_element_type=jnp.float32) + b2, 0.0
    )
    out_ref = jnp.dot(h.astype(jnp.bfloat16), wh, preferred_element_type=jnp.float32) + bh
    ref_logits = out_ref[:, :action_dim]
    ref_value = out_ref[:, action_dim]

    # Kernel output is bf16 (final rounding only); compare in f32 with a
    # tolerance that covers one bf16 ulp at these magnitudes.
    assert jnp.allclose(
        logits.astype(jnp.float32), ref_logits, atol=2e-2, rtol=2e-2
    ), jnp.max(jnp.abs(logits.astype(jnp.float32) - ref_logits))
    assert jnp.allclose(
        value.astype(jnp.float32), ref_value, atol=2e-2, rtol=2e-2
    ), jnp.max(jnp.abs(value.astype(jnp.float32) - ref_value))

    print("KERNEL_OK")
</pallas_src>

<mosaic_0001>
module attributes {stable_mosaic.version = 11 : i64} {
  func.func @_ppo_forward_kernel(%arg0: i32, %arg1: memref<16x16xf32, #tpu.memory_space<vmem>>, %arg2: memref<16x512xbf16, #tpu.memory_space<vmem>>, %arg3: memref<1x512xf32, #tpu.memory_space<vmem>>, %arg4: memref<512x256xbf16, #tpu.memory_space<vmem>>, %arg5: memref<1x256xf32, #tpu.memory_space<vmem>>, %arg6: memref<256x128xbf16, #tpu.memory_space<vmem>>, %arg7: memref<1x128xf32, #tpu.memory_space<vmem>>, %arg8: memref<16x128xbf16, #tpu.memory_space<vmem>>) attributes {dimension_semantics = [#tpu.dimension_semantics<parallel>], iteration_bounds = array<i64: 1>, scalar_prefetch = 0 : i64, scratch_operands = 0 : i64, tpu.core_type = #tpu.core_type<tc>, window_params = [{transform_indices = @transform_0, window_bounds = array<i64: 16, 16>}, {pipeline_mode = #tpu.pipeline_mode<synchronous>, transform_indices = @transform_1, window_bounds = array<i64: 16, 512>}, {pipeline_mode = #tpu.pipeline_mode<synchronous>, transform_indices = @transform_2, window_bounds = array<i64: 1, 512>}, {pipeline_mode = #tpu.pipeline_mode<synchronous>, transform_indices = @transform_3, window_bounds = array<i64: 512, 256>}, {pipeline_mode = #tpu.pipeline_mode<synchronous>, transform_indices = @transform_4, window_bounds = array<i64: 1, 256>}, {pipeline_mode = #tpu.pipeline_mode<synchronous>, transform_indices = @transform_5, window_bounds = array<i64: 256, 128>}, {pipeline_mode = #tpu.pipeline_mode<synchronous>, transform_indices = @transform_6, window_bounds = array<i64: 1, 128>}, {transform_indices = @transform_7, window_bounds = array<i64: 16, 128>}]} {
    %c0 = arith.constant 0 : index
    %c0_0 = arith.constant 0 : index
    %0 = vector.load %arg1[%c0, %c0_0] : memref<16x16xf32, #tpu.memory_space<vmem>>, vector<16x16xf32>
    %1 = arith.truncf %0 : vector<16x16xf32> to vector<16x16xbf16>
    %c0_1 = arith.constant 0 : index
    %c0_2 = arith.constant 0 : index
    %2 = vector.load %arg2[%c0_1, %c0_2] : memref<16x512xbf16, #tpu.memory_space<vmem>>, vector<16x512xbf16>
    %cst = arith.constant dense<0.000000e+00> : vector<16x512xf32>
    %3 = tpu.matmul %1, %2, %cst {dimension_numbers = #tpu.dot_dimension_numbers<[1], [0], [0], [1], [0, 0, 1, 1], [], []>} : vector<16x16xbf16>, vector<16x512xbf16>, vector<16x512xf32> -> vector<16x512xf32>
    %c0_3 = arith.constant 0 : index
    %c0_4 = arith.constant 0 : index
    %4 = vector.load %arg3[%c0_3, %c0_4] : memref<1x512xf32, #tpu.memory_space<vmem>>, vector<1x512xf32>
    %5 = vector.broadcast %4 : vector<1x512xf32> to vector<16x512xf32>
    %6 = arith.addf %3, %5 : vector<16x512xf32>
    %cst_5 = arith.constant 0.000000e+00 : f32
    %7 = vector.broadcast %cst_5 : f32 to vector<16x512xf32>
    %8 = arith.maximumf %6, %7 : vector<16x512xf32>
    %9 = arith.truncf %8 : vector<16x512xf32> to vector<16x512xbf16>
    %c0_6 = arith.constant 0 : index
    %c0_7 = arith.constant 0 : index
    %10 = vector.load %arg4[%c0_6, %c0_7] : memref<512x256xbf16, #tpu.memory_space<vmem>>, vector<512x256xbf16>
    %cst_8 = arith.constant dense<0.000000e+00> : vector<16x256xf32>
    %11 = tpu.matmul %9, %10, %cst_8 {dimension_numbers = #tpu.dot_dimension_numbers<[1], [0], [0], [1], [0, 0, 1, 1], [], []>} : vector<16x512xbf16>, vector<512x256xbf16>, vector<16x256xf32> -> vector<16x256xf32>
    %c0_9 = arith.constant 0 : index
    %c0_10 = arith.constant 0 : index
    %12 = vector.load %arg5[%c0_9, %c0_10] : memref<1x256xf32, #tpu.memory_space<vmem>>, vector<1x256xf32>
    %13 = vector.broadcast %12 : vector<1x256xf32> to vector<16x256xf32>
    %14 = arith.addf %11, %13 : vector<16x256xf32>
    %cst_11 = arith.constant 0.000000e+00 : f32
    %15 = vector.broadcast %cst_11 : f32 to vector<16x256xf32>
    %16 = arith.maximumf %14, %15 : vector<16x256xf32>
    %17 = arith.truncf %16 : vector<16x256xf32> to vector<16x256xbf16>
    %c0_12 = arith.constant 0 : index
    %c0_13 = arith.constant 0 : index
    %18 = vector.load %arg6[%c0_12, %c0_13] : memref<256x128xbf16, #tpu.memory_space<vmem>>, vector<256x128xbf16>
    %cst_14 = arith.constant dense<0.000000e+00> : vector<16x128xf32>
    %19 = tpu.matmul %17, %18, %cst_14 {dimension_numbers = #tpu.dot_dimension_numbers<[1], [0], [0], [1], [0, 0, 1, 1], [], []>} : vector<16x256xbf16>, vector<256x128xbf16>, vector<16x128xf32> -> vector<16x128xf32>
    %c0_15 = arith.constant 0 : index
    %c0_16 = arith.constant 0 : index
    %20 = vector.load %arg7[%c0_15, %c0_16] : memref<1x128xf32, #tpu.memory_space<vmem>>, vector<1x128xf32>
    %21 = vector.broadcast %20 : vector<1x128xf32> to vector<16x128xf32>
    %22 = arith.addf %19, %21 : vector<16x128xf32>
    %23 = arith.truncf %22 : vector<16x128xf32> to vector<16x128xbf16>
    %c0_17 = arith.constant 0 : index
    %c0_18 = arith.constant 0 : index
    %24 = vector.load %arg8[%c0_17, %c0_18] : memref<16x128xbf16, #tpu.memory_space<vmem>>, vector<16x128xbf16>
    tpu.vector_store %arg8[%c0_17, %c0_18], %23 {strides = array<i32>} : memref<16x128xbf16, #tpu.memory_space<vmem>>, vector<16x128xbf16>,
    return
  }
  func.func @transform_0(%arg0: i32) -> (i32, i32) {
    %c0_i32 = arith.constant 0 : i32
    %c0_i32_0 = arith.constant 0 : i32
    return %arg0, %c0_i32 : i32, i32
  }
  func.func @transform_1(%arg0: i32) -> (i32, i32) {
    %c0_i32 = arith.constant 0 : i32
    %c0_i32_0 = arith.constant 0 : i32
    %c0_i32_1 = arith.constant 0 : i32
    return %c0_i32, %c0_i32_0 : i32, i32
  }
  func.func @transform_2(%arg0: i32) -> (i32, i32) {
    %c0_i32 = arith.constant 0 : i32
    %c0_i32_0 = arith.constant 0 : i32
    %c0_i32_1 = arith.constant 0 : i32
    return %c0_i32, %c0_i32_0 : i32, i32
  }
  func.func @transform_3(%arg0: i32) -> (i32, i32) {
    %c0_i32 = arith.constant 0 : i32
    %c0_i32_0 = arith.constant 0 : i32
    %c0_i32_1 = arith.constant 0 : i32
    return %c0_i32, %c0_i32_0 : i32, i32
  }
  func.func @transform_4(%arg0: i32) -> (i32, i32) {
    %c0_i32 = arith.constant 0 : i32
    %c0_i32_0 = arith.constant 0 : i32
    %c0_i32_1 = arith.constant 0 : i32
    return %c0_i32, %c0_i32_0 : i32, i32
  }
  func.func @transform_5(%arg0: i32) -> (i32, i32) {
    %c0_i32 = arith.constant 0 : i32
    %c0_i32_0 = arith.constant 0 : i32
    %c0_i32_1 = arith.constant 0 : i32
    return %c0_i32, %c0_i32_0 : i32, i32
  }
  func.func @transform_6(%arg0: i32) -> (i32, i32) {
    %c0_i32 = arith.constant 0 : i32
    %c0_i32_0 = arith.constant 0 : i32
    %c0_i32_1 = arith.constant 0 : i32
    return %c0_i32, %c0_i32_0 : i32, i32
  }
  func.func @transform_7(%arg0: i32) -> (i32, i32) {
    %c0_i32 = arith.constant 0 : i32
    %c0_i32_0 = arith.constant 0 : i32
    return %arg0, %c0_i32 : i32, i32
  }
}

</mosaic_0001>

<bundles_post_ra>
// kernel: ppo_forward.1
= control target key start
LH: loop header
LB: loop body
LE: loop exit
PB: predicated region body
PF: predicated region fallthrough
CT: control target
= control target key end

     0   :  { %12 = vsyncpa [#allocation3], 0  ;;  %s1343_s0 = inlined_call_operand.vmem [shape: f32[16,16], index: 0, kind: input, shape index: {}]   ;;  %s1344_s1 = inlined_call_operand.hbm [shape: bf16[16,512], index: 1, kind: input, shape index: {}]   ;;  %s1345_s2 = inlined_call_operand.vmem [shape: f32[1,512], index: 2, kind: input, shape index: {}]   ;;  %s1346_s3 = inlined_call_operand.hbm [shape: bf16[512,256], index: 3, kind: input, shape index: {}]   ;;  %s1347_s4 = inlined_call_operand.vmem [shape: f32[1,256], index: 4, kind: input, shape index: {}]   ;;  %s1348_s5 = inlined_call_operand.hbm [shape: bf16[256,128], index: 5, kind: input, shape index: {}]   ;;  %s1349_s6 = inlined_call_operand.vmem [shape: f32[1,128], index: 6, kind: input, shape index: {}]   ;;  %s1350_s7 = inlined_call_operand.vmem [shape: bf16[16,128], index: 7, kind: output, shape index: {}]  }
   0x1   :  { %13 = vsyncpa [#allocation5], 0  ;;  %s1223_s24 = smov [#allocation4]   ;;  %s1153_s28 = scalar_lea.hbm %s1346_s3, 8192 }
   0x2   :  { %s35_s25 = sshll.u32 %s1223_s24, 4  ;;  %p1154_p0 = scmp.ne.s32.totalorder %s1346_s3, %s1153_s28  ;;  %s36_s25 = int_to_ptr.vmem [resolvable:$true] %s35_s25 }
   0x3   :  { %p1157_p1 = scmp.lt.u32.totalorder %s1153_s28, %s1346_s3 }
   0x5   :  { %p1159_p2 = pnand %p1157_p1, %p1154_p0 }
   0x7   :  { %1162 = shalt.err (!%p1159_p2)
}
   0x8   :  { %s1163_s10 = scalar_lea.vmem %s36_s25, 8192  ;;  %p1168_p4 = scmp.lt.s32.totalorder %s36_s25, %s36_s25 }
   0x9   :  { %p1164_p3 = scmp.ne.s32.totalorder %s36_s25, %s1163_s10  ;;  %p1169_p5 = scmp.lt.s32.totalorder %s1163_s10, %s1163_s10 }
   0xb   :  { %p1170_p6 = por %p1169_p5, %p1168_p4 }
   0xd   :  { %p1171_p7 = pnand %p1170_p6, %p1164_p3 }
   0xf   :  { %1174 = shalt.err (!%p1171_p7)
}
  0x10   :  { %s1224_s11 = smov 128   ;;  %s1225_s12 = smov 8  }
  0x11   :  { %41 = dma.hbm_to_vmem [thread:$0]  %s1346_s3, 8192, %s36_s25, [#allocation5], %s1224_s11, %s1224_s11, %s1225_s12  }
  0x12   :  { %s1226_s15 = smov [#allocation2]   ;;  %s1175_s19 = scalar_lea.hbm %s1344_s1, 512 }
  0x13   :  { %s21_s16 = sshll.u32 %s1226_s15, 4  ;;  %p1176_p8 = scmp.ne.s32.totalorder %s1344_s1, %s1175_s19  ;;  %s22_s16 = int_to_ptr.vmem [resolvable:$true] %s21_s16 }
  0x14   :  { %p1179_p9 = scmp.lt.u32.totalorder %s1175_s19, %s1344_s1 }
  0x16   :  { %p1181_p10 = pnand %p1179_p9, %p1176_p8 }
  0x18   :  { %1184 = shalt.err (!%p1181_p10)
}
  0x19   :  { %s1185_s24 = scalar_lea.vmem %s22_s16, 512  ;;  %p1190_p12 = scmp.lt.s32.totalorder %s22_s16, %s22_s16 }
  0x1a   :  { %p1186_p11 = scmp.ne.s32.totalorder %s22_s16, %s1185_s24  ;;  %p1191_p13 = scmp.lt.s32.totalorder %s1185_s24, %s1185_s24 }
  0x1c   :  { %p1192_p0 = por %p1191_p13, %p1190_p12 }
  0x1e   :  { %p1193_p1 = pnand %p1192_p0, %p1186_p11 }
  0x20   :  { %1196 = shalt.err (!%p1193_p1)
}
  0x21   :  { %s1227_s3 = smov 256   ;;  %s1228_s25 = smov 16  }
  0x22   :  { %27 = dma.hbm_to_vmem [thread:$0]  %s1344_s1, 512, %s22_s16, [#allocation3], %s1227_s3, %s1227_s3, %s1228_s25  }
  0x23   :  { %s1229_s28 = smov [#allocation6]   ;;  %s1197_s9 = scalar_lea.hbm %s1348_s5, 2048 }
  0x24   :  { %s49_s29 = sshll.u32 %s1229_s28, 4  ;;  %p1198_p2 = scmp.ne.s32.totalorder %s1348_s5, %s1197_s9  ;;  %s50_s29 = int_to_ptr.vmem [resolvable:$true] %s49_s29 }
  0x25   :  { %p1201_p3 = scmp.lt.u32.totalorder %s1197_s9, %s1348_s5 }
  0x27   :  { %p1203_p4 = pnand %p1201_p3, %p1198_p2 }
  0x29   :  { %1206 = shalt.err (!%p1203_p4)
}
  0x2a   :  { %s1207_s14 = scalar_lea.vmem %s50_s29, 2048  ;;  %p1212_p6 = scmp.lt.s32.totalorder %s50_s29, %s50_s29 }
  0x2b   :  { %p1208_p5 = scmp.ne.s32.totalorder %s50_s29, %s1207_s14  ;;  %p1213_p7 = scmp.lt.s32.totalorder %s1207_s14, %s1207_s14 }
  0x2d   :  { %p1214_p8 = por %p1213_p7, %p1212_p6 }
  0x2f   :  { %p1215_p9 = pnand %p1214_p8, %p1208_p5 }
  0x31   :  { %1218 = shalt.err (!%p1215_p9)
}
  0x32   :  { %s1230_s1 = smov 64   ;;  %s1231_s15 = smov 4  }
  0x33   :  { %55 = dma.hbm_to_vmem [thread:$0]  %s1348_s5, 2048, %s50_s29, [#allocation5], %s1230_s1, %s1230_s1, %s1231_s15  }
  0x34   :  { %1219 = dma.done.wait [#allocation3], 512  }
  0x35   :  { %1220 = vsyncadd [#allocation3], 4294966784 }
  0x36   :  { %1221 = dma.done.wait [#allocation5], 10240  }
  0x37   :  { %1222 = vsyncadd [#allocation5], 4294957056  ;;  %v1232_v0 = vmov 0   ;;  %v1035_v1 = vld [vmem:[#allocation2 + $0x4] ss:$16 sps:$4 sm:$0xff]   ;;  %v68_v3 = vld [vmem:[%s1343_s0] sm:$0xff] }
  0x38   :  { %153 = vmatprep.mubr.bf16.mxu0 %v1232_v0  ;;  %v1037_v2 = vld [vmem:[#allocation2] ss:$16 sps:$4 sm:$0xff]   ;;  %121 = vmatprep.subr.bf16.mxu0 %v1035_v1  ;;  %v1038_v6 = vld [vmem:[#allocation2 + $0x8] ss:$16 sps:$4 sm:$0xff]   ;;  %vm117_vm0 = vcmask 130048  }
  0x39   :  { %v69_v4 = vld [vmem:[%s1343_s0 + $0x8] sm:$0xff]  ;;  %122 = vmatpush1.bf16.msra.mxu0 %v1037_v2  ;;  %v1040_v7 = vld [vmem:[#allocation2 + $0xc] ss:$16 sps:$4 sm:$0xff]   ;;  %v1046_v11 = vld [vmem:[#allocation4 + $0x10] ss:$8 sps:$4 sm:$0xff]  }
  0x3a   :  { %v70_v5 = vpack.c.bf16 %v69_v4, %v68_v3  ;;  %v1041_v8 = vld [vmem:[#allocation4 + $0x4] ss:$8 sps:$4 sm:$0xff]   ;;  %v1043_v9 = vld [vmem:[#allocation4] ss:$8 sps:$4 sm:$0xff]   ;;  %164 = vmatprep.subr.bf16.mxu0 %v1040_v7  ;;  %v1044_v10 = vld [vmem:[#allocation4 + $0x14] ss:$8 sps:$4 sm:$0xff]  }
  0x3b   :  { %615 = vmatprep.subr.bf16.mxu1 %v1041_v8  ;;  %v1051_v12 = vld [vmem:[#allocation4 + $0x104] ss:$8 sps:$4 sm:$0xff]   ;;  %v1049_v14 = vld [vmem:[#allocation4 + $0x100] ss:$8 sps:$4 sm:$0xff]   ;;  %v1057_v16 = vld [vmem:[#allocation4 + $0x114] ss:$8 sps:$4 sm:$0xff]  }
  0x3c   :  { %903 = vmatmul.mubr.msk.bf16.vlgmr.msra.gmra.mrb[0].mxu0 %vm117_vm0, %v70_v5  ;;  %616 = vmatpush1.bf16.msra.mxu1 %v1043_v9  ;;  %v1047_v13 = vld [vmem:[#allocation4 + $0x24] ss:$8 sps:$4 sm:$0xff]   ;;  %v1052_v15 = vld [vmem:[#allocation4 + $0x20] ss:$8 sps:$4 sm:$0xff]   ;;  %v1053_v17 = vld [vmem:[#allocation4 + $0x34] ss:$8 sps:$4 sm:$0xff]   ;;  %v77_v9 = vlaneseq }
  0x3d   :  { %165 = vmatpush1.bf16.msra.mxu0 %v1038_v6  ;;  %196 = vmatprep.mubr.bf16.mxu0 %v1232_v0  ;;  %v1055_v18 = vld [vmem:[#allocation4 + $0x110] ss:$8 sps:$4 sm:$0xff]   ;;  %v1063_v20 = vld [vmem:[#allocation4 + $0x124] ss:$8 sps:$4 sm:$0xff]   ;;  %v1061_v22 = vld [vmem:[#allocation4 + $0x120] ss:$8 sps:$4 sm:$0xff]  }
  0x3e   :  { %617 = vmatprep.subr.bf16.mxu1 %v1044_v10  ;;  %658 = vmatprep.subr.bf16.mxu0 %v1051_v12  ;;  %v1058_v19 = vld [vmem:[#allocation4 + $0x30] ss:$8 sps:$4 sm:$0xff]   ;;  %v1059_v21 = vld [vmem:[#allocation4 + $0x44] ss:$8 sps:$4 sm:$0xff]   ;;  %v1064_v23 = vld [vmem:[#allocation4 + $0x40] ss:$8 sps:$4 sm:$0xff]  }
  0x3f   :  { %v1069_v24 = vld [vmem:[#allocation4 + $0x134] ss:$8 sps:$4 sm:$0xff]   ;;  %v1067_v26 = vld [vmem:[#allocation4 + $0x130] ss:$8 sps:$4 sm:$0xff]   ;;  %v1075_v28 = vld [vmem:[#allocation4 + $0x144] ss:$8 sps:$4 sm:$0xff]  }
  0x40   :  { %618 = vmatpush1.bf16.msra.mxu1 %v1046_v11  ;;  %v1065_v25 = vld [vmem:[#allocation4 + $0x54] ss:$8 sps:$4 sm:$0xff]   ;;  %v1070_v27 = vld [vmem:[#allocation4 + $0x50] ss:$8 sps:$4 sm:$0xff]   ;;  %v1071_v29 = vld [vmem:[#allocation4 + $0x64] ss:$8 sps:$4 sm:$0xff]  }
  0x41   :  { %619 = vmatprep.subr.bf16.mxu1 %v1047_v13  ;;  %v1073_v30 = vld [vmem:[#allocation4 + $0x140] ss:$8 sps:$4 sm:$0xff]   ;;  %v1081_v32 = vld [vmem:[#allocation4 + $0x154] ss:$8 sps:$4 sm:$0xff]   ;;  %v1079_v34 = vld [vmem:[#allocation4 + $0x150] ss:$8 sps:$4 sm:$0xff]  }
  0x42   :  { %v1076_v31 = vld [vmem:[#allocation4 + $0x60] ss:$8 sps:$4 sm:$0xff]   ;;  %v1077_v33 = vld [vmem:[#allocation4 + $0x74] ss:$8 sps:$4 sm:$0xff]   ;;  %v1082_v35 = vld [vmem:[#allocation4 + $0x70] ss:$8 sps:$4 sm:$0xff]  }
  0x43   :  { %v1087_v36 = vld [vmem:[#allocation4 + $0x164] ss:$8 sps:$4 sm:$0xff]   ;;  %v1085_v38 = vld [vmem:[#allocation4 + $0x160] ss:$8 sps:$4 sm:$0xff]   ;;  %v1093_v40 = vld [vmem:[#allocation4 + $0x174] ss:$8 sps:$4 sm:$0xff]  }
  0x44   :  { %904 = vmatmul.mubr.msk.bf16.vlgmr.msra.gmra.mrb[4].mxu0 %vm117_vm0, %v70_v5  ;;  %620 = vmatpush1.bf16.msra.mxu1 %v1052_v15  ;;  %v1083_v37 = vld [vmem:[#allocation4 + $0x84] ss:$8 sps:$4 sm:$0xff]   ;;  %v1088_v39 = vld [vmem:[#allocation4 + $0x80] ss:$8 sps:$4 sm:$0xff]   ;;  %v1089_v41 = vld [vmem:[#allocation4 + $0x94] ss:$8 sps:$4 sm:$0xff]  }
  0x45   :  { %659 = vmatpush1.bf16.msra.mxu0 %v1049_v14  ;;  %621 = vmatprep.subr.bf16.mxu1 %v1053_v17  ;;  %v1091_v42 = vld [vmem:[#allocation4 + $0x170] ss:$8 sps:$4 sm:$0xff]   ;;  %v1099_v44 = vld [vmem:[#allocation4 + $0x184] ss:$8 sps:$4 sm:$0xff]   ;;  %v1097_v46 = vld [vmem:[#allocation4 + $0x180] ss:$8 sps:$4 sm:$0xff]  }
  0x46   :  { %660 = vmatprep.subr.bf16.mxu0 %v1057_v16  ;;  %v1094_v43 = vld [vmem:[#allocation4 + $0x90] ss:$8 sps:$4 sm:$0xff]   ;;  %v1095_v45 = vld [vmem:[#allocation4 + $0xa4] ss:$8 sps:$4 sm:$0xff]   ;;  %v1100_v47 = vld [vmem:[#allocation4 + $0xa0] ss:$8 sps:$4 sm:$0xff]  }
  0x47   :  { %v1105_v48 = vld [vmem:[#allocation4 + $0x194] ss:$8 sps:$4 sm:$0xff]   ;;  %v1103_v50 = vld [vmem:[#allocation4 + $0x190] ss:$8 sps:$4 sm:$0xff]   ;;  %v1111_v52 = vld [vmem:[#allocation4 + $0x1a4] ss:$8 sps:$4 sm:$0xff]  }
  0x48   :  { %622 = vmatpush1.bf16.msra.mxu1 %v1058_v19  ;;  %v1101_v49 = vld [vmem:[#allocation4 + $0xb4] ss:$8 sps:$4 sm:$0xff]   ;;  %v1106_v51 = vld [vmem:[#allocation4 + $0xb0] ss:$8 sps:$4 sm:$0xff]   ;;  %v1107_v53 = vld [vmem:[#allocation4 + $0xc4] ss:$8 sps:$4 sm:$0xff]  }
  0x49   :  { %661 = vmatpush1.bf16.msra.mxu0 %v1055_v18  ;;  %623 = vmatprep.subr.bf16.mxu1 %v1059_v21  ;;  %v1109_v54 = vld [vmem:[#allocation4 + $0x1a0] ss:$8 sps:$4 sm:$0xff]   ;;  %v1117_v56 = vld [vmem:[#allocation4 + $0x1b4] ss:$8 sps:$4 sm:$0xff]   ;;  %v1115_v58 = vld [vmem:[#allocation4 + $0x1b0] ss:$8 sps:$4 sm:$0xff]  }
  0x4a   :  { %662 = vmatprep.subr.bf16.mxu0 %v1063_v20  ;;  %v1112_v55 = vld [vmem:[#allocation4 + $0xc0] ss:$8 sps:$4 sm:$0xff]   ;;  %v1113_v57 = vld [vmem:[#allocation4 + $0xd4] ss:$8 sps:$4 sm:$0xff]   ;;  %v1118_v59 = vld [vmem:[#allocation4 + $0xd0] ss:$8 sps:$4 sm:$0xff]  }
  0x4b   :  { %v1119_v60 = vld [vmem:[#allocation4 + $0xe4] ss:$8 sps:$4 sm:$0xff]   ;;  %v1121_v62 = vld [vmem:[#allocation4 + $0x1c0] ss:$8 sps:$4 sm:$0xff]   ;;  %v1125_v0 = vld [vmem:[#allocation4 + $0xf4] ss:$8 sps:$4 sm:$0xff]  }
  0x4c   :  { %624 = vmatpush1.bf16.msra.mxu1 %v1064_v23  ;;  %v1123_v61 = vld [vmem:[#allocation4 + $0x1c4] ss:$8 sps:$4 sm:$0xff]   ;;  %v1124_v63 = vld [vmem:[#allocation4 + $0xe0] ss:$8 sps:$4 sm:$0xff]   ;;  %v1129_v1 = vld [vmem:[#allocation4 + $0x1d4] ss:$8 sps:$4 sm:$0xff]  }
  0x4d   :  { %663 = vmatpush1.bf16.msra.mxu0 %v1061_v22  ;;  %625 = vmatprep.subr.bf16.mxu1 %v1065_v25  ;;  %v1127_v2 = vld [vmem:[#allocation4 + $0x1d0] ss:$8 sps:$4 sm:$0xff]   ;;  %v1133_v4 = vld [vmem:[#allocation4 + $0x1e4] ss:$8 sps:$4 sm:$0xff]   ;;  %v1131_v5 = vld [vmem:[#allocation4 + $0x1e0] ss:$8 sps:$4 sm:$0xff]  }
  0x4e   :  { %664 = vmatprep.subr.bf16.mxu0 %v1069_v24  ;;  %v1130_v3 = vld [vmem:[#allocation4 + $0xf0] ss:$8 sps:$4 sm:$0xff]   ;;  %v1136_v6 = vld [vmem:[#allocation4 + $0x1f4] ss:$8 sps:$4 sm:$0xff]   ;;  %v1137_v8 = vld [vmem:[#allocation6 + $0x40] sm:$0xff]   ;;  %v1317_v10 = vshrl.u32 %v77_v9, 7 }
  0x4f   :  { %v1134_v7 = vld [vmem:[#allocation4 + $0x1f0] ss:$8 sps:$4 sm:$0xff]  }
  0x50   :  { %626 = vmatpush1.bf16.msra.mxu1 %v1070_v27  ;;  %v79_v11 = vsub.s32 0, %v1317_v10  ;;  %v75_v12 = vld [vmem:[%s1345_s2] sm:$0xf]  ;;  %v83_v13 = vsub.s32 1, %v1317_v10  ;;  %v87_v19 = vsub.s32 2, %v1317_v10  ;;  %v91_v22 = vsub.s32 3, %v1317_v10 }
  0x51   :  { %665 = vmatpush1.bf16.msra.mxu0 %v1067_v26  ;;  %627 = vmatprep.subr.bf16.mxu1 %v1071_v29 }
  0x52   :  { %666 = vmatprep.subr.bf16.mxu0 %v1075_v28  ;;  %v80_v14 = vrot.slane %v75_v12, %v79_v11  ;;  %v84_v15 = vrot.slane %v75_v12, %v83_v13  ;;  %v88_v28 = vrot.slane %v75_v12, %v87_v19 }
  0x54   :  { %628 = vmatpush1.bf16.msra.mxu1 %v1076_v31  ;;  %v92_v31 = vrot.slane %v75_v12, %v91_v22 }
  0x55   :  { %667 = vmatpush1.bf16.msra.mxu0 %v1073_v30  ;;  %629 = vmatprep.subr.bf16.mxu1 %v1077_v33 }
  0x56   :  { %668 = vmatprep.subr.bf16.mxu0 %v1081_v32 }
  0x58   :  { %630 = vmatpush1.bf16.msra.mxu1 %v1082_v35  ;;  %v1138_v35 = vld [vmem:[#allocation6] sm:$0xff]  }
  0x59   :  { %669 = vmatpush1.bf16.msra.mxu0 %v1079_v34  ;;  %631 = vmatprep.subr.bf16.mxu1 %v1083_v37 }
  0x5a   :  { %670 = vmatprep.subr.bf16.mxu0 %v1087_v36 }
  0x5c   :  { %632 = vmatpush1.bf16.msra.mxu1 %v1088_v39 }
  0x5d   :  { %671 = vmatpush1.bf16.msra.mxu0 %v1085_v38  ;;  %633 = vmatprep.subr.bf16.mxu1 %v1089_v41  ;;  %v1139_v38 = vld [vmem:[#allocation6 + $0x48] sm:$0xff]  }
  0x5e   :  { %672 = vmatprep.subr.bf16.mxu0 %v1093_v40 }
  0x60   :  { %634 = vmatpush1.bf16.msra.mxu1 %v1094_v43 }
  0x61   :  { %673 = vmatpush1.bf16.msra.mxu0 %v1091_v42  ;;  %635 = vmatprep.subr.bf16.mxu1 %v1095_v45 }
  0x62   :  { %674 = vmatprep.subr.bf16.mxu0 %v1099_v44  ;;  %v1140_v44 = vld [vmem:[#allocation6 + $0x8] sm:$0xff]  }
  0x64   :  { %636 = vmatpush1.bf16.msra.mxu1 %v1100_v47  ;;  %v1141_v47 = vld [vmem:[#allocation6 + $0x50] sm:$0xff]  }
  0x65   :  { %675 = vmatpush1.bf16.msra.mxu0 %v1097_v46  ;;  %637 = vmatprep.subr.bf16.mxu1 %v1101_v49 }
  0x66   :  { %676 = vmatprep.subr.bf16.mxu0 %v1105_v48 }
  0x68   :  { %638 = vmatpush1.bf16.msra.mxu1 %v1106_v51 }
  0x69   :  { %677 = vmatpush1.bf16.msra.mxu0 %v1103_v50  ;;  %639 = vmatprep.subr.bf16.mxu1 %v1107_v53  ;;  %v1143_v53 = vld [vmem:[#allocation6 + $0x58] sm:$0xff]  }
  0x6a   :  { %678 = vmatprep.subr.bf16.mxu0 %v1111_v52  ;;  %v1142_v52 = vld [vmem:[#allocation6 + $0x10] sm:$0xff]  }
  0x6c   :  { %640 = vmatpush1.bf16.msra.mxu1 %v1112_v55  ;;  %v1145_v55 = vld [vmem:[#allocation6 + $0x60] sm:$0xff]  }
  0x6d   :  { %679 = vmatpush1.bf16.msra.mxu0 %v1109_v54  ;;  %641 = vmatprep.subr.bf16.mxu1 %v1113_v57  ;;  %v1144_v54 = vld [vmem:[#allocation6 + $0x18] sm:$0xff]   ;;  %v1147_v57 = vld [vmem:[#allocation6 + $0x68] sm:$0xff]  }
  0x6e   :  { %680 = vmatprep.subr.bf16.mxu0 %v1117_v56  ;;  %v1146_v56 = vld [vmem:[#allocation6 + $0x20] sm:$0xff]  }
  0x70   :  { %642 = vmatpush1.bf16.msra.mxu1 %v1118_v59  ;;  %v1149_v59 = vld [vmem:[#allocation6 + $0x70] sm:$0xff]  }
  0x71   :  { %681 = vmatpush1.bf16.msra.mxu0 %v1115_v58  ;;  %643 = vmatprep.subr.bf16.mxu1 %v1119_v60  ;;  %v1148_v58 = vld [vmem:[#allocation6 + $0x28] sm:$0xff]   ;;  %v1150_v60 = vld [vmem:[#allocation6 + $0x30] sm:$0xff]  }
  0x72   :  { %682 = vmatprep.subr.bf16.mxu0 %v1123_v61  ;;  %v1151_v61 = vld [vmem:[#allocation6 + $0x78] sm:$0xff]  }
  0x74   :  { %644 = vmatpush1.bf16.msra.mxu1 %v1124_v63  ;;  %v283_v63 = vld [vmem:[%s1347_s4] sm:$0x3] }
  0x75   :  { %683 = vmatpush1.bf16.msra.mxu0 %v1121_v62  ;;  %645 = vmatprep.subr.bf16.mxu1 %v1125_v0  ;;  %v1152_v62 = vld [vmem:[#allocation6 + $0x38] sm:$0xff]  }
  0x76   :  { %684 = vmatprep.subr.bf16.mxu0 %v1129_v1 }
  0x78   :  { %646 = vmatpush1.bf16.msra.mxu1 %v1130_v3  ;;  %v288_v3 = vrot.slane %v283_v63, %v79_v11 }
  0x79   :  { %685 = vmatpush1.bf16.msra.mxu0 %v1127_v2  ;;  %995 = vmatprep.subr.bf16.mxu1 %v1137_v8 }
  0x7a   :  { %686 = vmatprep.subr.bf16.mxu0 %v1133_v4 }
  0x7d   :  { %687 = vmatpush1.bf16.msra.mxu0 %v1131_v5  ;;  %v292_v5 = vrot.slane %v283_v63, %v83_v13 }
  0x7e   :  { %688 = vmatprep.subr.bf16.mxu0 %v1136_v6 }
  0x81   :  { %689 = vmatpush1.bf16.msra.mxu0 %v1134_v7 }
 0x10f   :  { %v155_v16 = vpop.f32.mrb[0].mxu0 }
 0x110   :  { %v156_v17 = vadd.f32 %v155_v16, %v80_v14  ;;  %v157_v18 = vpop.f32.mrb[1].mxu0 }
 0x111   :  { %v158_v20 = vadd.f32 %v157_v18, %v84_v15  ;;  %v159_v21 = vpop.f32.mrb[2].mxu0 }
 0x112   :  { %v160_v23 = vadd.f32 %v159_v21, %v80_v14  ;;  %v161_v24 = vpop.f32.mrb[3].mxu0  ;;  %v207_v26 = vmax.f32 %v156_v17, 0.0 }
 0x113   :  { %v162_v25 = vadd.f32 %v161_v24, %v84_v15  ;;  %v208_v29 = vmax.f32 %v158_v20, 0.0 }
 0x114   :  { %v211_v27 = vmax.f32 %v160_v23, 0.0 }
 0x115   :  { %v212_v30 = vmax.f32 %v162_v25, 0.0 }
 0x116   :  { %v215_v32 = vpack.c.bf16 %v211_v27, %v207_v26 }
 0x117   :  { %v198_v33 = vpop.f32.mrb[4].mxu0  ;;  %v216_v34 = vpack.c.bf16 %v212_v30, %v208_v29 }
 0x118   :  { %v199_v36 = vadd.f32 %v198_v33, %v88_v28  ;;  %v200_v37 = vpop.f32.mrb[5].mxu0 }
 0x119   :  { %v201_v39 = vadd.f32 %v200_v37, %v92_v31  ;;  %v202_v40 = vpop.f32.mrb[6].mxu0  ;;  %647 = vmatprep.mubr.bf16.mxu1 %v216_v34 }
 0x11a   :  { %v203_v41 = vadd.f32 %v202_v40, %v88_v28  ;;  %v204_v42 = vpop.f32.mrb[7].mxu0  ;;  %648 = vmatmul.mubr.bf16.vlgmr.msra.gmra.mrb[0].mxu1 %v215_v32  ;;  %v209_v45 = vmax.f32 %v199_v36, 0.0  ;;  %v969_v28 = vld [vmem:[%s1349_s6] ss:$0 sm:$0xff] }
 0x11b   :  { %v205_v43 = vadd.f32 %v204_v42, %v92_v31  ;;  %996 = vmatpush3.bf16.msra.mxu1 %v1138_v35  ;;  %v210_v48 = vmax.f32 %v201_v39, 0.0 }
 0x11c   :  { %v213_v46 = vmax.f32 %v203_v41, 0.0  ;;  %997 = vmatprep.subr.bf16.mxu1 %v1139_v38 }
 0x11d   :  { %v214_v49 = vmax.f32 %v205_v43, 0.0 }
 0x11e   :  { %v217_v50 = vpack.c.bf16 %v213_v46, %v209_v45 }
 0x11f   :  { %v218_v51 = vpack.c.bf16 %v214_v49, %v210_v48  ;;  %998 = vmatpush3.bf16.msra.mxu1 %v1140_v44 }
 0x120   :  { %999 = vmatprep.subr.bf16.mxu1 %v1141_v47 }
 0x121   :  { %690 = vmatprep.mubr.bf16.mxu0 %v218_v51 }
 0x122   :  { %691 = vmatmul.mubr.bf16.vlgmr.msra.gmra.mrb[8].mxu0 %v217_v50 }
 0x123   :  { %1000 = vmatpush3.bf16.msra.mxu1 %v1142_v52 }
 0x124   :  { %1001 = vmatprep.subr.bf16.mxu1 %v1143_v53 }
 0x127   :  { %1002 = vmatpush3.bf16.msra.mxu1 %v1144_v54 }
 0x128   :  { %1003 = vmatprep.subr.bf16.mxu1 %v1145_v55 }
 0x12b   :  { %1004 = vmatpush3.bf16.msra.mxu1 %v1146_v56 }
 0x12c   :  { %1005 = vmatprep.subr.bf16.mxu1 %v1147_v57 }
 0x12f   :  { %1006 = vmatpush3.bf16.msra.mxu1 %v1148_v58 }
 0x130   :  { %1007 = vmatprep.subr.bf16.mxu1 %v1149_v59 }
 0x133   :  { %1008 = vmatpush3.bf16.msra.mxu1 %v1150_v60 }
 0x134   :  { %1009 = vmatprep.subr.bf16.mxu1 %v1151_v61 }
 0x137   :  { %1010 = vmatpush3.bf16.msra.mxu1 %v1152_v62 }
 0x1ed   :  { %v649_v0 = vpop.f32.mrb[0].mxu1 }
 0x1ee   :  { %v651_v1 = vpop.f32.mrb[1].mxu1  ;;  %v650_v6 = vadd.f32 %v649_v0, %v288_v3 }
 0x1ef   :  { %v653_v2 = vpop.f32.mrb[2].mxu1  ;;  %v652_v7 = vadd.f32 %v651_v1, %v292_v5 }
 0x1f0   :  { %v655_v4 = vpop.f32.mrb[3].mxu1  ;;  %v654_v9 = vadd.f32 %v653_v2, %v288_v3 }
 0x1f1   :  { %v656_v15 = vadd.f32 %v655_v4, %v292_v5 }
 0x1f5   :  { %v692_v8 = vpop.f32.mrb[8].mxu0 }
 0x1f6   :  { %v693_v12 = vadd.f32 %v692_v8, %v650_v6  ;;  %v694_v14 = vpop.f32.mrb[9].mxu0 }
 0x1f7   :  { %v695_v16 = vadd.f32 %v694_v14, %v652_v7  ;;  %v696_v17 = vpop.f32.mrb[10].mxu0 }
 0x1f8   :  { %v697_v18 = vadd.f32 %v696_v17, %v654_v9  ;;  %v698_v19 = vpop.f32.mrb[11].mxu0  ;;  %v701_v21 = vmax.f32 %v693_v12, 0.0 }
 0x1f9   :  { %v699_v20 = vadd.f32 %v698_v19, %v656_v15  ;;  %v702_v23 = vmax.f32 %v695_v16, 0.0 }
 0x1fa   :  { %v703_v22 = vmax.f32 %v697_v18, 0.0 }
 0x1fb   :  { %v704_v11 = vmax.f32 %v699_v20, 0.0 }
 0x1fc   :  { %v705_v24 = vpack.c.bf16 %v703_v22, %v701_v21 }
 0x1fd   :  { %v706_v25 = vpack.c.bf16 %v704_v11, %v702_v23 }
 0x1ff   :  { %874 = vmatprep.mubr.bf16.mxu1 %v706_v25 }
 0x200   :  { %875 = vmatmul.mubr.bf16.vlgmr.msra.gmra.mrb[4].mxu1 %v705_v24 }
 0x2d3   :  { %v1011_v10 = vpop.f32.mrb[4].mxu1 }
 0x2d4   :  { %v1012_v13 = vpop.f32.mrb[5].mxu1 }
 0x2d5   :  { %v1013_v26 = vadd.f32 %v1012_v13, %v1011_v10  ;;  %v1014_v27 = vpop.f32.mrb[6].mxu1 }
 0x2d6   :  { %v1015_v29 = vpop.f32.mrb[7].mxu1 }
 0x2d7   :  { %v1016_v30 = vadd.f32 %v1015_v29, %v1014_v27  ;;  %v877_v31 = vadd.f32 %v1013_v26, %v969_v28 }
 0x2d9   :  { %v880_v32 = vadd.f32 %v1016_v30, %v969_v28 }
 0x2db   :  { %v993_v33 = vpack.c.bf16 %v880_v32, %v877_v31 }
 0x2dd   :  { %994 = vst [vmem:[%s1350_s7] sm:$0xff] %v993_v33  }
 0x2de   :  { %897 = vsyncpa [#allocation3], 1 }
 0x2df   :  { %898 = vsyncpa [#allocation5], 1 }

</bundles_post_ra>
